<compile_context>
chip_gen: v5e
topology: v5e:2x2
jax: 0.10.0
libtpu: 0.0.40
codegen_flags: <defaults>
</compile_context>

<pallas_src>
import functools

import jax
import jax.numpy as jnp
from jax.experimental import pallas as pl
from jax.experimental.pallas import tpu as pltpu

_LANE = 128
_SUB = 8
_TARGET_BLOCK_BYTES = 2 * 1024 * 1024   # per-input, per-pipeline-buffer DMA chunk
_NSPLIT = 2                             # shard reduction across TCs on v7x; harmless on 1-TC chips


def _iou_kernel(x_ref, t_ref, o_ref, inter_acc, total_acc, *,
                tiles_per_split, block_rows, n_valid):
    c = pl.program_id(0)   # "parallel" core-split axis
    i = pl.program_id(1)   # "arbitrary" reduction axis

    @pl.when(i == 0)
    def _():
        inter_acc[...] = jnp.zeros_like(inter_acc)
        total_acc[...] = jnp.zeros_like(total_acc)

    # Cast + sigmoid in-kernel (EUP/VPU work, hidden under the HBM-bound DMA);
    # keeps HBM traffic at the caller's native dtype.
    x = jax.nn.sigmoid(x_ref[...].astype(jnp.float32))
    t = t_ref[...].astype(jnp.float32)

    block_elems = block_rows * _LANE
    elem_start = (c * tiles_per_split + i) * block_elems
    fully_valid = (elem_start + block_elems) <= n_valid

    # Fast path (every interior tile): pure full-vreg VPU accumulation,
    # no iota / compare / select work.
    @pl.when(fully_valid)
    def _():
        inter_acc[...] += x * t
        total_acc[...] += x + t

    # Slow path (boundary / duplicated tiles only): mask by logical flat
    # element index.  This zeroes out
    #   (a) zero-padding added to reach a multiple of 1024 elements,
    #   (b) out-of-bounds rows of a partial last block,
    #   (c) duplicated tiles introduced by an uneven core split.
    @pl.when(jnp.logical_not(fully_valid))
    def _():
        row_ids = jax.lax.broadcasted_iota(jnp.int32, (block_rows, _LANE), 0)
        lane_ids = jax.lax.broadcasted_iota(jnp.int32, (block_rows, _LANE), 1)
        valid = (elem_start + row_ids * _LANE + lane_ids) < n_valid
        inter_acc[...] += jnp.where(valid, x * t, 0.0)
        total_acc[...] += jnp.where(valid, x + t, 0.0)

    # Single cross-lane reduce per core, in the epilogue only.
    @pl.when(i == pl.num_programs(1) - 1)
    def _():
        o_ref[0, 0] = jnp.sum(inter_acc[...])
        o_ref[0, 1] = jnp.sum(total_acc[...])


def iou_loss(inputs, targets, smooth=1.0):
    """Pallas TPU implementation of IoULoss.forward (returns a scalar)."""
    x = inputs.reshape(-1)     # free bitcast, native dtype (no wrapper f32 cast)
    t = targets.reshape(-1)
    n = x.shape[0]

    # Pad with zeros only up to the next multiple of one (8, 128) tile so the
    # 2-D reshape below stays a free bitcast.  For typical segmentation shapes
    # (element count a multiple of 1024) this branch is skipped entirely, so
    # there is no extra HBM pass.  Padded elements are masked in-kernel.
    min_tile = _SUB * _LANE
    pad = (-n) % min_tile
    if pad:
        x = jnp.pad(x, (0, pad))
        t = jnp.pad(t, (0, pad))

    rows = (n + pad) // _LANE            # multiple of 8
    x2 = x.reshape(rows, _LANE)
    t2 = t.reshape(rows, _LANE)

    # ~2 MiB of input per block (per pipeline buffer): large enough to amortize
    # the ~0.35 us/step grid overhead (>85% of HBM roofline), small enough to
    # leave generous VMEM headroom on v5e/v6e/v7x.
    itemsize = jnp.dtype(x2.dtype).itemsize
    max_rows = max(_SUB, (_TARGET_BLOCK_BYTES // (_LANE * itemsize)) // _SUB * _SUB)
    block_rows = min(max_rows, rows)               # multiple of 8
    total_tiles = pl.cdiv(rows, block_rows)
    nsplit = _NSPLIT if total_tiles >= _NSPLIT else 1
    tiles_per_split = pl.cdiv(total_tiles, nsplit)

    def in_map(c, i):
        # Clamp so any "extra" tile of an uneven split re-reads the last valid
        # block (in-bounds DMA); its contribution is zeroed by the mask.
        return (jnp.minimum(c * tiles_per_split + i, total_tiles - 1), 0)

    kernel = functools.partial(
        _iou_kernel,
        tiles_per_split=tiles_per_split,
        block_rows=block_rows,
        n_valid=n,
    )

    partials = pl.pallas_call(
        kernel,
        out_shape=jax.ShapeDtypeStruct((nsplit, 2), jnp.float32),
        grid_spec=pltpu.PrefetchScalarGridSpec(
            num_scalar_prefetch=0,
            grid=(nsplit, tiles_per_split),
            in_specs=[
                pl.BlockSpec((block_rows, _LANE), in_map),
                pl.BlockSpec((block_rows, _LANE), in_map),
            ],
            out_specs=pl.BlockSpec((1, 2), lambda c, i: (c, 0),
                                   memory_space=pltpu.SMEM),
            scratch_shapes=[
                pltpu.VMEM((block_rows, _LANE), jnp.float32),
                pltpu.VMEM((block_rows, _LANE), jnp.float32),
            ],
        ),
        compiler_params=pltpu.CompilerParams(
            dimension_semantics=("parallel", "arbitrary"),
            # ~8 MiB of double-buffered input blocks + ~4 MiB f32 accumulators;
            # a 32 MiB scoped limit leaves ample headroom on all chips.
            vmem_limit_bytes=32 * 1024 * 1024,
        ),
    )(x2, t2)

    inter = jnp.sum(partials[:, 0])
    total = jnp.sum(partials[:, 1])
    union = total - inter
    smooth = jnp.float32(smooth)
    return 1.0 - (inter + smooth) / (union + smooth)


def _iou_loss_ref(inputs, targets, smooth=1.0):
    x = jax.nn.sigmoid(inputs.astype(jnp.float32)).reshape(-1)
    t = targets.astype(jnp.float32).reshape(-1)
    inter = jnp.sum(x * t)
    total = jnp.sum(x + t)
    union = total - inter
    return 1.0 - (inter + smooth) / (union + smooth)


if __name__ == "__main__":
    key = jax.random.PRNGKey(0)
    k1, k2, k3, k4 = jax.random.split(key, 4)

    # Primary small test: segmentation logits / mask pair (NCHW).
    shape = (2, 4, 16, 16)
    inputs = jax.random.normal(k1, shape, dtype=jnp.float32)
    targets = (jax.random.uniform(k2, shape) > 0.5).astype(jnp.float32)

    loss = iou_loss(inputs, targets, smooth=1.0)
    loss = jax.block_until_ready(loss)
    ref = _iou_loss_ref(inputs, targets, smooth=1.0)
    assert jnp.allclose(loss, ref, rtol=1e-5, atol=1e-5), (loss, ref)

    # Secondary test exercising padding, multi-tile grid, core-split,
    # partial-last-block masking and the fast/slow accumulation paths.
    shape2 = (2, 4, 260, 300)
    inputs2 = jax.random.normal(k3, shape2, dtype=jnp.float32)
    targets2 = (jax.random.uniform(k4, shape2) > 0.5).astype(jnp.float32)

    loss2 = iou_loss(inputs2, targets2, smooth=1.0)
    loss2 = jax.block_until_ready(loss2)
    ref2 = _iou_loss_ref(inputs2, targets2, smooth=1.0)
    assert jnp.allclose(loss2, ref2, rtol=1e-5, atol=1e-5), (loss2, ref2)

    print("KERNEL_OK")
</pallas_src>

<mosaic_0001>
module attributes {stable_mosaic.version = 11 : i64} {
  func.func @_iou_kernel(%arg0: i32, %arg1: i32, %arg2: memref<16x128xf32, #tpu.memory_space<vmem>>, %arg3: memref<16x128xf32, #tpu.memory_space<vmem>>, %arg4: memref<1x2xf32, #tpu.memory_space<smem>>, %arg5: memref<16x128xf32, #tpu.memory_space<vmem>>, %arg6: memref<16x128xf32, #tpu.memory_space<vmem>>) attributes {dimension_semantics = [#tpu.dimension_semantics<parallel>, #tpu.dimension_semantics<arbitrary>], iteration_bounds = array<i64: 1, 1>, scalar_prefetch = 0 : i64, scratch_operands = 2 : i64, tpu.core_type = #tpu.core_type<tc>, window_params = [{transform_indices = @transform_0, window_bounds = array<i64: 16, 128>}, {transform_indices = @transform_1, window_bounds = array<i64: 16, 128>}, {transform_indices = @transform_2, window_bounds = array<i64: 1, 2>}]} {
    %c0_i32 = arith.constant 0 : i32
    %0 = arith.cmpi eq, %arg1, %c0_i32 : i32
    %1 = arith.extui %0 : i1 to i32
    %c0_i32_0 = arith.constant 0 : i32
    %2 = arith.cmpi ne, %1, %c0_i32_0 : i32
    scf.if %2 {
      %cst_10 = arith.constant 0.000000e+00 : f32
      %23 = vector.broadcast %cst_10 : f32 to vector<16x128xf32>
      %c0_11 = arith.constant 0 : index
      %c0_12 = arith.constant 0 : index
      %24 = vector.load %arg5[%c0_11, %c0_12] : memref<16x128xf32, #tpu.memory_space<vmem>>, vector<16x128xf32>
      tpu.vector_store %arg5[%c0_11, %c0_12], %23 {strides = array<i32>} : memref<16x128xf32, #tpu.memory_space<vmem>>, vector<16x128xf32>,
      %cst_13 = arith.constant 0.000000e+00 : f32
      %25 = vector.broadcast %cst_13 : f32 to vector<16x128xf32>
      %c0_14 = arith.constant 0 : index
      %c0_15 = arith.constant 0 : index
      %26 = vector.load %arg6[%c0_14, %c0_15] : memref<16x128xf32, #tpu.memory_space<vmem>>, vector<16x128xf32>
      tpu.vector_store %arg6[%c0_14, %c0_15], %25 {strides = array<i32>} : memref<16x128xf32, #tpu.memory_space<vmem>>, vector<16x128xf32>,
    } else {
    }
    %c0 = arith.constant 0 : index
    %c0_1 = arith.constant 0 : index
    %3 = vector.load %arg2[%c0, %c0_1] : memref<16x128xf32, #tpu.memory_space<vmem>>, vector<16x128xf32>
    %4 = arith.negf %3 : vector<16x128xf32>
    %5 = math.exp %4 : vector<16x128xf32>
    %cst = arith.constant 1.000000e+00 : f32
    %6 = vector.broadcast %cst : f32 to vector<16x128xf32>
    %7 = arith.addf %6, %5 : vector<16x128xf32>
    %8 = arith.divf %6, %7 : vector<16x128xf32>
    %c0_2 = arith.constant 0 : index
    %c0_3 = arith.constant 0 : index
    %9 = vector.load %arg3[%c0_2, %c0_3] : memref<16x128xf32, #tpu.memory_space<vmem>>, vector<16x128xf32>
    %c1_i32 = arith.constant 1 : i32
    %10 = arith.muli %arg0, %c1_i32 : i32
    %11 = arith.addi %10, %arg1 : i32
    %c2048_i32 = arith.constant 2048 : i32
    %12 = arith.muli %11, %c2048_i32 : i32
    %c2048_i32_4 = arith.constant 2048 : i32
    %13 = arith.addi %12, %c2048_i32_4 : i32
    %c2048_i32_5 = arith.constant 2048 : i32
    %14 = arith.cmpi sle, %13, %c2048_i32_5 : i32
    %15 = arith.extui %14 : i1 to i32
    %c0_i32_6 = arith.constant 0 : i32
    %16 = arith.cmpi ne, %15, %c0_i32_6 : i32
    scf.if %16 {
      %c0_10 = arith.constant 0 : index
      %c0_11 = arith.constant 0 : index
      %23 = vector.load %arg5[%c0_10, %c0_11] : memref<16x128xf32, #tpu.memory_space<vmem>>, vector<16x128xf32>
      %24 = arith.mulf %8, %9 : vector<16x128xf32>
      %25 = arith.addf %23, %24 : vector<16x128xf32>
      %c0_12 = arith.constant 0 : index
      %c0_13 = arith.constant 0 : index
      %26 = vector.load %arg5[%c0_12, %c0_13] : memref<16x128xf32, #tpu.memory_space<vmem>>, vector<16x128xf32>
      tpu.vector_store %arg5[%c0_12, %c0_13], %25 {strides = array<i32>} : memref<16x128xf32, #tpu.memory_space<vmem>>, vector<16x128xf32>,
      %c0_14 = arith.constant 0 : index
      %c0_15 = arith.constant 0 : index
      %27 = vector.load %arg6[%c0_14, %c0_15] : memref<16x128xf32, #tpu.memory_space<vmem>>, vector<16x128xf32>
      %28 = arith.addf %8, %9 : vector<16x128xf32>
      %29 = arith.addf %27, %28 : vector<16x128xf32>
      %c0_16 = arith.constant 0 : index
      %c0_17 = arith.constant 0 : index
      %30 = vector.load %arg6[%c0_16, %c0_17] : memref<16x128xf32, #tpu.memory_space<vmem>>, vector<16x128xf32>
      tpu.vector_store %arg6[%c0_16, %c0_17], %29 {strides = array<i32>} : memref<16x128xf32, #tpu.memory_space<vmem>>, vector<16x128xf32>,
    } else {
    }
    %true = arith.constant true
    %17 = arith.xori %14, %true : i1
    %18 = arith.extui %17 : i1 to i32
    %c0_i32_7 = arith.constant 0 : i32
    %19 = arith.cmpi ne, %18, %c0_i32_7 : i32
    scf.if %19 {
      %23 = tpu.iota {dimensions = array<i32: 0>} : vector<16x128xi32>
      %24 = tpu.iota {dimensions = array<i32: 1>} : vector<16x128xi32>
      %c128_i32 = arith.constant 128 : i32
      %25 = vector.broadcast %c128_i32 : i32 to vector<16x128xi32>
      %26 = arith.muli %23, %25 : vector<16x128xi32>
      %27 = vector.broadcast %12 : i32 to vector<16x128xi32>
      %28 = arith.addi %27, %26 : vector<16x128xi32>
      %29 = arith.addi %28, %24 : vector<16x128xi32>
      %c2048_i32_10 = arith.constant 2048 : i32
      %30 = vector.broadcast %c2048_i32_10 : i32 to vector<16x128xi32>
      %31 = arith.cmpi slt, %29, %30 : vector<16x128xi32>
      %c0_11 = arith.constant 0 : index
      %c0_12 = arith.constant 0 : index
      %32 = vector.load %arg5[%c0_11, %c0_12] : memref<16x128xf32, #tpu.memory_space<vmem>>, vector<16x128xf32>
      %33 = arith.mulf %8, %9 : vector<16x128xf32>
      %cst_13 = arith.constant 0.000000e+00 : f32
      %34 = vector.broadcast %cst_13 : f32 to vector<16x128xf32>
      %35 = arith.select %31, %33, %34 : vector<16x128xi1>, vector<16x128xf32>
      %36 = arith.addf %32, %35 : vector<16x128xf32>
      %c0_14 = arith.constant 0 : index
      %c0_15 = arith.constant 0 : index
      %37 = vector.load %arg5[%c0_14, %c0_15] : memref<16x128xf32, #tpu.memory_space<vmem>>, vector<16x128xf32>
      tpu.vector_store %arg5[%c0_14, %c0_15], %36 {strides = array<i32>} : memref<16x128xf32, #tpu.memory_space<vmem>>, vector<16x128xf32>,
      %c0_16 = arith.constant 0 : index
      %c0_17 = arith.constant 0 : index
      %38 = vector.load %arg6[%c0_16, %c0_17] : memref<16x128xf32, #tpu.memory_space<vmem>>, vector<16x128xf32>
      %39 = arith.addf %8, %9 : vector<16x128xf32>
      %cst_18 = arith.constant 0.000000e+00 : f32
      %40 = vector.broadcast %cst_18 : f32 to vector<16x128xf32>
      %41 = arith.select %31, %39, %40 : vector<16x128xi1>, vector<16x128xf32>
      %42 = arith.addf %38, %41 : vector<16x128xf32>
      %c0_19 = arith.constant 0 : index
      %c0_20 = arith.constant 0 : index
      %43 = vector.load %arg6[%c0_19, %c0_20] : memref<16x128xf32, #tpu.memory_space<vmem>>, vector<16x128xf32>
      tpu.vector_store %arg6[%c0_19, %c0_20], %42 {strides = array<i32>} : memref<16x128xf32, #tpu.memory_space<vmem>>, vector<16x128xf32>,
    } else {
    }
    %c0_i32_8 = arith.constant 0 : i32
    %20 = arith.cmpi eq, %arg1, %c0_i32_8 : i32
    %21 = arith.extui %20 : i1 to i32
    %c0_i32_9 = arith.constant 0 : i32
    %22 = arith.cmpi ne, %21, %c0_i32_9 : i32
    scf.if %22 {
      %c0_10 = arith.constant 0 : index
      %c0_11 = arith.constant 0 : index
      %23 = vector.load %arg5[%c0_10, %c0_11] : memref<16x128xf32, #tpu.memory_space<vmem>>, vector<16x128xf32>
      %24 = vector.shape_cast %23 : vector<16x128xf32> to vector<1x16x128xf32>
      %cst_12 = arith.constant dense<0.000000e+00> : vector<1xf32>
      %25 = vector.multi_reduction <add>, %24, %cst_12 [1, 2] : vector<1x16x128xf32> to vector<1xf32>
      %26 = vector.shape_cast %25 : vector<1xf32> to vector<1x1x1xf32>
      %27 = vector.extract %26[0, 0, 0] : f32 from vector<1x1x1xf32>
      %c0_13 = arith.constant 0 : index
      %c0_14 = arith.constant 0 : index
      %28 = memref.load %arg4[%c0_13, %c0_14] : memref<1x2xf32, #tpu.memory_space<smem>>
      memref.store %27, %arg4[%c0_13, %c0_14] : memref<1x2xf32, #tpu.memory_space<smem>>
      %c0_15 = arith.constant 0 : index
      %c0_16 = arith.constant 0 : index
      %29 = vector.load %arg6[%c0_15, %c0_16] : memref<16x128xf32, #tpu.memory_space<vmem>>, vector<16x128xf32>
      %30 = vector.shape_cast %29 : vector<16x128xf32> to vector<1x16x128xf32>
      %cst_17 = arith.constant dense<0.000000e+00> : vector<1xf32>
      %31 = vector.multi_reduction <add>, %30, %cst_17 [1, 2] : vector<1x16x128xf32> to vector<1xf32>
      %32 = vector.shape_cast %31 : vector<1xf32> to vector<1x1x1xf32>
      %33 = vector.extract %32[0, 0, 0] : f32 from vector<1x1x1xf32>
      %c0_18 = arith.constant 0 : index
      %c1 = arith.constant 1 : index
      %34 = memref.load %arg4[%c0_18, %c1] : memref<1x2xf32, #tpu.memory_space<smem>>
      memref.store %33, %arg4[%c0_18, %c1] : memref<1x2xf32, #tpu.memory_space<smem>>
    } else {
    }
    return
  }
  func.func @transform_0(%arg0: i32, %arg1: i32) -> (i32, i32) {
    %c1_i32 = arith.constant 1 : i32
    %0 = arith.muli %arg0, %c1_i32 : i32
    %1 = arith.addi %0, %arg1 : i32
    %c0_i32 = arith.constant 0 : i32
    %2 = arith.minsi %1, %c0_i32 : i32
    %c0_i32_0 = arith.constant 0 : i32
    %c0_i32_1 = arith.constant 0 : i32
    return %2, %c0_i32_0 : i32, i32
  }
  func.func @transform_1(%arg0: i32, %arg1: i32) -> (i32, i32) {
    %c1_i32 = arith.constant 1 : i32
    %0 = arith.muli %arg0, %c1_i32 : i32
    %1 = arith.addi %0, %arg1 : i32
    %c0_i32 = arith.constant 0 : i32
    %2 = arith.minsi %1, %c0_i32 : i32
    %c0_i32_0 = arith.constant 0 : i32
    %c0_i32_1 = arith.constant 0 : i32
    return %2, %c0_i32_0 : i32, i32
  }
  func.func @transform_2(%arg0: i32, %arg1: i32) -> (i32, i32) {
    %c0_i32 = arith.constant 0 : i32
    %c0_i32_0 = arith.constant 0 : i32
    return %arg0, %c0_i32 : i32, i32
  }
}

</mosaic_0001>

<bundles_post_ra>
// kernel: tpu_custom_call.1
= control target key start
LH: loop header
LB: loop body
LE: loop exit
PB: predicated region body
PF: predicated region fallthrough
CT: control target
= control target key end

     0   :  { %7 = vsyncpa [#allocation5], 0  ;;  %s341_s0 = inlined_call_operand.hbm [shape: f32[16,128], index: 0, kind: input, shape index: {}]   ;;  %s342_s1 = inlined_call_operand.hbm [shape: f32[16,128], index: 1, kind: input, shape index: {}]   ;;  %s343_s2 = inlined_call_operand.hbm [shape: f32[1,2], index: 2, kind: output, shape index: {}]  }
   0x1   :  { %8 = vsyncpa [#allocation8], 0 }
   0x2   :  { %9 = vsyncpa [#allocation6], 0  ;;  %s20_s11 = sshll.u32 %s341_s0, 4  ;;  %s312_s12 = smov [#allocation4]   ;;  %s21_s11 = int_to_ptr.hbm [resolvable:$true] %s20_s11 }
   0x3   :  { %s22_s13 = sshll.u32 %s312_s12, 4  ;;  %s39_s16 = sshll.u32 %s342_s1, 4  ;;  %s23_s13 = int_to_ptr.vmem [resolvable:$true] %s22_s13  ;;  %s40_s16 = int_to_ptr.hbm [resolvable:$true] %s39_s16 }
   0x4   :  { %s313_s17 = smov 128   ;;  %s314_s18 = smov 8  }
   0x5   :  { %28 = dma.hbm_to_vmem [thread:$0]  %s21_s11, 256, %s23_s13, [#allocation5], %s313_s17, %s313_s17, %s314_s18  }
   0x6   :  { %s315_s19 = smov [#allocation7]  }
   0x7   :  { %s41_s20 = sshll.u32 %s315_s19, 4  ;;  %s42_s20 = int_to_ptr.vmem [resolvable:$true] %s41_s20 }
   0x8   :  { %47 = dma.hbm_to_vmem [thread:$0]  %s40_s16, 256, %s42_s20, [#allocation8], %s313_s17, %s313_s17, %s314_s18  }
   0x9   :  { %306 = dma.done.wait [#allocation5], 256  }
   0xa   :  { %307 = vsyncadd [#allocation5], 4294967040 }
   0xb   :  { %308 = dma.done.wait [#allocation8], 256  }
   0xc   :  { %309 = vsyncadd [#allocation8], 4294967040  ;;  %v72_v0 = vld [vmem:[#allocation4] sm:$0xff]  ;;  %v73_v1 = vld [vmem:[#allocation4 + $0x8] sm:$0xff]  ;;  %s211_s22 = sshll.u32 %s343_s2, 4  ;;  %s316_s24 = smov [#allocation9]   ;;  %s212_s22 = int_to_ptr.hbm [resolvable:$true] %s211_s22 }
   0xd   :  { %v227_v2 = vmul.f32 -1.442695, %v72_v0  ;;  %v228_v3 = vmul.f32 -1.442695, %v73_v1  ;;  %v112_v24 = vld [vmem:[#allocation7] sm:$0xff]  ;;  %v113_v26 = vld [vmem:[#allocation7 + $0x8] sm:$0xff] }
   0xf   :  { %238 = vpow2.f32 %v227_v2 }
  0x10   :  { %240 = vpow2.f32 %v228_v3 }
  0x15   :  { %v239_v4 = vpop.eup %238 }
  0x16   :  { %v241_v5 = vpop.eup %240  ;;  %v80_v6 = vadd.f32 1.0, %v239_v4 }
  0x17   :  { %v81_v7 = vadd.f32 1.0, %v241_v5 }
  0x18   :  { %242 = vrcp.f32 %v80_v6  ;;  %vm87_vm0 = vweird.f32 %v80_v6  ;;  %v93_v11 = vand.u32 2147483648, %v80_v6  ;;  %v91_v14 = vand.u32 2147483647, %v80_v6 }
  0x19   :  { %244 = vrcp.f32 %v81_v7  ;;  %v108_v15 = vand.u32 2147483648, %v81_v7  ;;  %vm102_vm2 = vweird.f32 %v81_v7  ;;  %v106_v17 = vand.u32 2147483647, %v81_v7 }
  0x1a   :  { %v94_v19 = vor.u32 1.1754944e-38, %v93_v11  ;;  %vm92_vm5 = vcmp.eq.f32.partialorder %v91_v14, 8.507059e+37 }
  0x1b   :  { %v109_v22 = vor.u32 1.1754944e-38, %v108_v15  ;;  %vm107_vm7 = vcmp.eq.f32.partialorder %v106_v17, 8.507059e+37 }
  0x1e   :  { %v243_v8 = vpop.eup %242 }
  0x1f   :  { %v245_v9 = vpop.eup %244  ;;  %v83_v10 = vmul.f32 %v243_v8, %v80_v6  ;;  %vm88_vm1 = vweird.f32 %v243_v8 }
  0x20   :  { %v98_v12 = vmul.f32 %v245_v9, %v81_v7  ;;  %vm103_vm3 = vweird.f32 %v245_v9  ;;  %vm89_vm4 = vmor %vm87_vm0, %vm88_vm1 }
  0x21   :  { %v84_v13 = vsub.f32 1.0, %v83_v10  ;;  %vm104_vm6 = vmor %vm102_vm2, %vm103_vm3 }
  0x22   :  { %v99_v16 = vsub.f32 1.0, %v98_v12 }
  0x23   :  { %v85_v18 = vmul.f32 %v243_v8, %v84_v13 }
  0x24   :  { %v100_v20 = vmul.f32 %v245_v9, %v99_v16 }
  0x25   :  { %v86_v21 = vadd.f32 %v243_v8, %v85_v18 }
  0x26   :  { %v101_v23 = vadd.f32 %v245_v9, %v100_v20 }
  0x27   :  { %v90_v25 = vsel %vm89_vm4, %v243_v8, %v86_v21 }
  0x28   :  { %v95_v27 = vsel %vm92_vm5, %v94_v19, %v90_v25  ;;  %v105_v28 = vsel %vm104_vm6, %v245_v9, %v101_v23 }
  0x29   :  { %v110_v29 = vsel %vm107_vm7, %v109_v22, %v105_v28  ;;  %v123_v30 = vmul.f32 %v112_v24, %v95_v27  ;;  %v131_v33 = vadd.f32 %v112_v24, %v95_v27 }
  0x2a   :  { %v124_v31 = vmul.f32 %v113_v26, %v110_v29  ;;  %v132_v34 = vadd.f32 %v113_v26, %v110_v29 }
  0x2c   :  { %v180_v32 = vadd.f32 %v124_v31, %v123_v30  ;;  %v194_v35 = vadd.f32 %v132_v34, %v131_v33 }
  0x2e   :  { %181 = vadd.xlane.f32.xlu0 %v180_v32 }
  0x36   :  { %195 = vadd.xlane.f32.xlu0 %v194_v35 }
  0xa1   :  { %v182_v36 = vpop.xlane.xlu0 %181 }
  0xa2   :  { %v183_v37 = vrot.slane %v182_v36, 4 }
  0xa4   :  { %v184_v38 = vadd.f32 %v183_v37, %v182_v36 }
  0xa6   :  { %v185_v39 = vrot.slane %v184_v38, 2 }
  0xa8   :  { %v186_v40 = vadd.f32 %v185_v39, %v184_v38 }
  0xa9   :  { %v196_v41 = vpop.xlane.xlu0 %195 }
  0xaa   :  { %v197_v42 = vrot.slane %v196_v41, 4  ;;  %v187_v43 = vrot.slane %v186_v40, 1 }
  0xac   :  { %v198_v44 = vadd.f32 %v197_v42, %v196_v41  ;;  %v188_v45 = vadd.f32 %v187_v43, %v186_v40 }
  0xae   :  { %v199_v46 = vrot.slane %v198_v44, 2  ;;  %229 = vpush %v188_v45 }
  0xb0   :  { %v200_v47 = vadd.f32 %v199_v46, %v198_v44 }
  0xb2   :  { %v201_v48 = vrot.slane %v200_v47, 1 }
  0xb4   :  { %v202_v49 = vadd.f32 %v201_v48, %v200_v47 }
  0xb6   :  { %231 = vpush %v202_v49 }
  0xdf   :  { %s230_s0 = spop %229 }
  0xe0   :  { %191 = sst [smem:[#allocation9]] %s230_s0 }
  0xe7   :  { %s232_s23 = spop %231 }
  0xe8   :  { %205 = sst [smem:[#allocation9 + $0x1]] %s232_s23 }
  0xe9   :  { %214 = dma.smem_to_hbm %s316_s24, 16, %s212_s22, [#allocation6]  }
  0xea   :  { %310 = dma.done.wait [#allocation6], 16  }
  0xeb   :  { %311 = vsyncadd [#allocation6], 4294967280 }
  0xec   :  { %219 = sfence }
  0xed   :  { %220 = vsyncpa [#allocation5], 1 }
  0xee   :  { %221 = vsyncpa [#allocation8], 1 }
  0xef   :  { %222 = vsyncpa [#allocation6], 1 }

</bundles_post_ra>
